<compile_context>
chip_gen: v6e
topology: v6e:2x2x1
jax: 0.10.0
libtpu: 0.0.40
codegen_flags: <defaults>
</compile_context>

<pallas_src>
import math
import jax
import jax.numpy as jnp
from jax.experimental import pallas as pl
from jax.experimental.pallas import tpu as pltpu


def _round_up(x: int, m: int) -> int:
    return ((x + m - 1) // m) * m


# ----------------------------------------------------------------------------
# Pallas kernel: tiled patch projection  out = patches @ W + b
#   patches tile : (tm, tk)  bf16
#   weight  tile : (tk, tn)  bf16
#   bias    tile : (1,  tn)  f32
#   output  tile : (tm, tn)  f32  (accumulated in a f32 VMEM scratch over K)
# Grid = (E tiles, M tiles, K tiles); K is innermost/"arbitrary" so the output
# tile is resident across the reduction, and with a single K tile the weight
# block index is constant across the inner M axis -> its DMA is skipped and the
# weight stays VMEM-resident for the whole E tile.
# ----------------------------------------------------------------------------
def _patch_embed_kernel(p_ref, w_ref, b_ref, o_ref, acc_ref):
    k = pl.program_id(2)

    @pl.when(k == 0)
    def _init():
        acc_ref[...] = jnp.zeros_like(acc_ref)

    acc_ref[...] += jnp.dot(p_ref[...], w_ref[...],
                            preferred_element_type=jnp.float32)

    @pl.when(k == pl.num_programs(2) - 1)
    def _finalize():
        o_ref[...] = (acc_ref[...] + b_ref[...]).astype(o_ref.dtype)


def _patch_project(patches, w, b, *, tm, tn, tk):
    """patches: (Mpad, Kpad) bf16, w: (Kpad, Epad) bf16, b: (1, Epad) f32
       -> (Mpad, Epad) f32."""
    Mp, Kp = patches.shape
    _, Ep = w.shape
    n_m, n_e, n_k = Mp // tm, Ep // tn, Kp // tk

    # Double-buffered per-step VMEM footprint (bf16 operands, f32 acc/out).
    vmem_budget = (2 * (tm * tk * 2 + tk * tn * 2 + tn * 4)
                   + 2 * tm * tn * 4 + tm * tn * 4)
    assert vmem_budget <= 24 * 1024 * 1024, "tile budget exceeds VMEM target"

    cost = pl.CostEstimate(
        flops=2 * Mp * Kp * Ep,
        transcendentals=0,
        bytes_accessed=Mp * Kp * 2 + Kp * Ep * 2 + Ep * 4 + Mp * Ep * 4,
    )

    return pl.pallas_call(
        _patch_embed_kernel,
        out_shape=jax.ShapeDtypeStruct((Mp, Ep), jnp.float32),
        grid_spec=pltpu.PrefetchScalarGridSpec(
            num_scalar_prefetch=0,
            grid=(n_e, n_m, n_k),
            in_specs=[
                pl.BlockSpec((tm, tk), lambda j, i, k: (i, k)),   # patches
                pl.BlockSpec((tk, tn), lambda j, i, k: (k, j)),   # weight
                pl.BlockSpec((1, tn), lambda j, i, k: (0, j)),    # bias
            ],
            out_specs=pl.BlockSpec((tm, tn), lambda j, i, k: (i, j)),
            scratch_shapes=[pltpu.VMEM((tm, tn), jnp.float32)],
        ),
        compiler_params=pltpu.CompilerParams(
            dimension_semantics=("parallel", "parallel", "arbitrary"),
            vmem_limit_bytes=32 * 1024 * 1024,   # safe on v5e/v6e/v7x
        ),
        cost_estimate=cost,
    )(patches, w, b)


# ----------------------------------------------------------------------------
# Module equivalent
# ----------------------------------------------------------------------------
class CNN2ViTProjector:
    def __init__(self, in_shapes, embed_tokens: int, embed_dim: int, key):
        _, c, h, w = in_shapes
        assert h == w, "feature width should be as same as the height"
        self.h = int(embed_tokens ** 0.5)
        self.patch_size = int(math.ceil(h / embed_tokens ** 0.5))
        self.img_size = int(self.h * self.patch_size)
        self.in_chans = c
        self.embed_dim = embed_dim

        # Conv2d(c, embed_dim, kernel=patch_size, stride=patch_size) params,
        # deterministically initialized (kaiming-uniform-like bounds).
        k_w, k_b = jax.random.split(key)
        fan_in = c * self.patch_size * self.patch_size        # K = C*p*p
        bound = 1.0 / math.sqrt(fan_in)
        w_conv = jax.random.uniform(
            k_w, (embed_dim, c, self.patch_size, self.patch_size),
            minval=-bound, maxval=bound, dtype=jnp.float32)
        # weight reshaped to (K, E), flatten order (c, kh, kw) to match Conv2d
        self.w_f32 = w_conv.reshape(embed_dim, fan_in).T      # (K, E) f32
        self.b_f32 = jax.random.uniform(
            k_b, (1, embed_dim), minval=-bound, maxval=bound, dtype=jnp.float32)

        # ---- MXU-friendly padded copies used by the kernel -----------------
        K, E = fan_in, embed_dim
        self.Kpad = _round_up(K, 128)
        self.tk = self.Kpad if self.Kpad <= 512 else 512
        self.Kpad = _round_up(self.Kpad, self.tk)
        self.Epad = _round_up(E, 128)
        self.tn = self.Epad if self.Epad <= 512 else 512
        self.Epad = _round_up(self.Epad, self.tn)

        self.w_pad = jnp.zeros((self.Kpad, self.Epad), jnp.bfloat16)
        self.w_pad = self.w_pad.at[:K, :E].set(self.w_f32.astype(jnp.bfloat16))
        self.b_pad = jnp.zeros((1, self.Epad), jnp.float32)
        self.b_pad = self.b_pad.at[:, :E].set(self.b_f32)

    @staticmethod
    def _nearest_resize_nchw(x, size):
        # PyTorch F.interpolate(mode='nearest'): src = floor(dst * in / out)
        B, C, H, W = x.shape
        rows = (jnp.arange(size) * H) // size
        cols = (jnp.arange(size) * W) // size
        return x[:, :, rows, :][:, :, :, cols]

    def _patchify(self, x):
        # (B, C, H, W) -> (B*nh*nw, C*p*p), flatten order (c, kh, kw)
        B, C, H, W = x.shape
        p = self.patch_size
        nh, nw = H // p, W // p
        # strided Conv2d silently drops remainder rows/cols -> crop explicitly
        x = x[:, :, :nh * p, :nw * p]
        patches = x.reshape(B, C, nh, p, nw, p)
        patches = jnp.transpose(patches, (0, 2, 4, 1, 3, 5))  # (B,nh,nw,C,p,p)
        return patches.reshape(B * nh * nw, C * p * p), (B, nh * nw)

    def __call__(self, x):
        # x: (B, C, H, W) float32
        if x.shape[2] < self.h:
            x = self._nearest_resize_nchw(x, self.h)
        elif x.shape[2] < self.img_size:
            x = self._nearest_resize_nchw(x, self.img_size)
        # TODO(synk): the patch gather (6-D transpose) still runs as one XLA
        # pass over the feature map; folding it into the kernel needs
        # (8,128)-aligned per-patch blocks which these shapes don't give.

        patches, (B, N) = self._patchify(x)
        M, K = patches.shape

        tm = 512 if M > 512 else _round_up(M, 8)
        Mpad = _round_up(M, tm)

        p_pad = jnp.zeros((Mpad, self.Kpad), jnp.bfloat16)
        p_pad = p_pad.at[:M, :K].set(patches.astype(jnp.bfloat16))

        out = _patch_project(p_pad, self.w_pad, self.b_pad,
                             tm=tm, tn=self.tn, tk=self.tk)   # (Mpad, Epad) f32
        return out[:M, :self.embed_dim].reshape(B, N, self.embed_dim)


# ----------------------------------------------------------------------------
# Pure-JAX f32 reference (for correctness check)
# ----------------------------------------------------------------------------
def _reference(proj: CNN2ViTProjector, x):
    if x.shape[2] < proj.h:
        x = proj._nearest_resize_nchw(x, proj.h)
    elif x.shape[2] < proj.img_size:
        x = proj._nearest_resize_nchw(x, proj.img_size)
    patches, (B, N) = proj._patchify(x)
    out = patches @ proj.w_f32 + proj.b_f32
    return out.reshape(B, N, proj.embed_dim)


if __name__ == "__main__":
    key = jax.random.PRNGKey(0)
    k_x, k_params = jax.random.split(key)

    # in_shapes = (B, C, H, W) = (2, 4, 16, 16), embed_tokens = 16, embed_dim = 32
    # -> self.h = 4, patch_size = 4, img_size = 16, output tokens = 16
    in_shapes = (2, 4, 16, 16)
    embed_tokens, embed_dim = 16, 32

    x = jax.random.normal(k_x, in_shapes, dtype=jnp.float32)
    proj = CNN2ViTProjector(in_shapes, embed_tokens, embed_dim, k_params)

    forward = jax.jit(proj.__call__)
    out = jax.block_until_ready(forward(x))

    ref = _reference(proj, x)
    assert out.shape == (2, embed_tokens, embed_dim), out.shape
    # bf16 operands / f32 accumulation vs pure-f32 reference -> loosened tol
    assert jnp.allclose(out, ref, atol=2e-2, rtol=2e-2), float(
        jnp.max(jnp.abs(out - ref)))

    print("KERNEL_OK")
</pallas_src>

<mosaic_0001>
module attributes {stable_mosaic.version = 11 : i64} {
  func.func @_patch_embed_kernel(%arg0: i32, %arg1: i32, %arg2: i32, %arg3: memref<32x128xbf16, #tpu.memory_space<vmem>>, %arg4: memref<128x128xbf16, #tpu.memory_space<vmem>>, %arg5: memref<1x128xf32, #tpu.memory_space<vmem>>, %arg6: memref<32x128xf32, #tpu.memory_space<vmem>>, %arg7: memref<32x128xf32, #tpu.memory_space<vmem>>) attributes {dimension_semantics = [#tpu.dimension_semantics<parallel>, #tpu.dimension_semantics<parallel>, #tpu.dimension_semantics<arbitrary>], iteration_bounds = array<i64: 1, 1, 1>, scalar_prefetch = 0 : i64, scratch_operands = 1 : i64, tpu.core_type = #tpu.core_type<tc>, window_params = [{transform_indices = @transform_0, window_bounds = array<i64: 32, 128>}, {transform_indices = @transform_1, window_bounds = array<i64: 128, 128>}, {transform_indices = @transform_2, window_bounds = array<i64: 1, 128>}, {transform_indices = @transform_3, window_bounds = array<i64: 32, 128>}]} {
    %c0_i32 = arith.constant 0 : i32
    %0 = arith.cmpi eq, %arg2, %c0_i32 : i32
    %1 = arith.extui %0 : i1 to i32
    %c0_i32_0 = arith.constant 0 : i32
    %2 = arith.cmpi ne, %1, %c0_i32_0 : i32
    scf.if %2 {
      %cst_10 = arith.constant 0.000000e+00 : f32
      %12 = vector.broadcast %cst_10 : f32 to vector<32x128xf32>
      %c0_11 = arith.constant 0 : index
      %c0_12 = arith.constant 0 : index
      %13 = vector.load %arg7[%c0_11, %c0_12] : memref<32x128xf32, #tpu.memory_space<vmem>>, vector<32x128xf32>
      tpu.vector_store %arg7[%c0_11, %c0_12], %12 {strides = array<i32>} : memref<32x128xf32, #tpu.memory_space<vmem>>, vector<32x128xf32>,
    } else {
    }
    %c0 = arith.constant 0 : index
    %c0_1 = arith.constant 0 : index
    %3 = vector.load %arg7[%c0, %c0_1] : memref<32x128xf32, #tpu.memory_space<vmem>>, vector<32x128xf32>
    %c0_2 = arith.constant 0 : index
    %c0_3 = arith.constant 0 : index
    %4 = vector.load %arg3[%c0_2, %c0_3] : memref<32x128xbf16, #tpu.memory_space<vmem>>, vector<32x128xbf16>
    %c0_4 = arith.constant 0 : index
    %c0_5 = arith.constant 0 : index
    %5 = vector.load %arg4[%c0_4, %c0_5] : memref<128x128xbf16, #tpu.memory_space<vmem>>, vector<128x128xbf16>
    %cst = arith.constant dense<0.000000e+00> : vector<32x128xf32>
    %6 = tpu.matmul %4, %5, %cst {dimension_numbers = #tpu.dot_dimension_numbers<[1], [0], [0], [1], [0, 0, 1, 1], [], []>} : vector<32x128xbf16>, vector<128x128xbf16>, vector<32x128xf32> -> vector<32x128xf32>
    %7 = arith.addf %3, %6 : vector<32x128xf32>
    %c0_6 = arith.constant 0 : index
    %c0_7 = arith.constant 0 : index
    %8 = vector.load %arg7[%c0_6, %c0_7] : memref<32x128xf32, #tpu.memory_space<vmem>>, vector<32x128xf32>
    tpu.vector_store %arg7[%c0_6, %c0_7], %7 {strides = array<i32>} : memref<32x128xf32, #tpu.memory_space<vmem>>, vector<32x128xf32>,
    %c0_i32_8 = arith.constant 0 : i32
    %9 = arith.cmpi eq, %arg2, %c0_i32_8 : i32
    %10 = arith.extui %9 : i1 to i32
    %c0_i32_9 = arith.constant 0 : i32
    %11 = arith.cmpi ne, %10, %c0_i32_9 : i32
    scf.if %11 {
      %c0_10 = arith.constant 0 : index
      %c0_11 = arith.constant 0 : index
      %12 = vector.load %arg7[%c0_10, %c0_11] : memref<32x128xf32, #tpu.memory_space<vmem>>, vector<32x128xf32>
      %c0_12 = arith.constant 0 : index
      %c0_13 = arith.constant 0 : index
      %13 = vector.load %arg5[%c0_12, %c0_13] : memref<1x128xf32, #tpu.memory_space<vmem>>, vector<1x128xf32>
      %14 = vector.broadcast %13 : vector<1x128xf32> to vector<32x128xf32>
      %15 = arith.addf %12, %14 : vector<32x128xf32>
      %c0_14 = arith.constant 0 : index
      %c0_15 = arith.constant 0 : index
      %16 = vector.load %arg6[%c0_14, %c0_15] : memref<32x128xf32, #tpu.memory_space<vmem>>, vector<32x128xf32>
      tpu.vector_store %arg6[%c0_14, %c0_15], %15 {strides = array<i32>} : memref<32x128xf32, #tpu.memory_space<vmem>>, vector<32x128xf32>,
    } else {
    }
    return
  }
  func.func @transform_0(%arg0: i32, %arg1: i32, %arg2: i32) -> (i32, i32) {
    %c0_i32 = arith.constant 0 : i32
    return %arg1, %arg2 : i32, i32
  }
  func.func @transform_1(%arg0: i32, %arg1: i32, %arg2: i32) -> (i32, i32) {
    %c0_i32 = arith.constant 0 : i32
    return %arg2, %arg0 : i32, i32
  }
  func.func @transform_2(%arg0: i32, %arg1: i32, %arg2: i32) -> (i32, i32) {
    %c0_i32 = arith.constant 0 : i32
    %c0_i32_0 = arith.constant 0 : i32
    return %c0_i32, %arg0 : i32, i32
  }
  func.func @transform_3(%arg0: i32, %arg1: i32, %arg2: i32) -> (i32, i32) {
    %c0_i32 = arith.constant 0 : i32
    return %arg1, %arg0 : i32, i32
  }
}

</mosaic_0001>

<bundles_post_ra>
// kernel: a_call__.1
= control target key start
LH: loop header
LB: loop body
LE: loop exit
PB: predicated region body
PF: predicated region fallthrough
CT: control target
= control target key end

     0   :  { %s338_s0 = inlined_call_operand.vmem [shape: bf16[32,128], index: 0, kind: input, shape index: {}]   ;;  %s339_s1 = inlined_call_operand.vmem [shape: bf16[128,128], index: 1, kind: input, shape index: {}]   ;;  %s340_s2 = inlined_call_operand.vmem [shape: f32[1,128], index: 2, kind: input, shape index: {}]   ;;  %s341_s3 = inlined_call_operand.hbm [shape: f32[32,128], index: 3, kind: output, shape index: {}]  }
   0x1   :  { %v247_v0 = vld [vmem:[%s339_s1 + $0x38] sm:$0xff]   ;;  %v248_v1 = vld [vmem:[%s339_s1 + $0x30] sm:$0xff]   ;;  %v249_v2 = vld [vmem:[%s339_s1 + $0x28] sm:$0xff]  }
   0x2   :  { %224 = vmatprep.subr.bf16.mxu0 %v247_v0  ;;  %v250_v3 = vld [vmem:[%s339_s1 + $0x20] sm:$0xff]  }
   0x3   :  { %225 = vmatpush3.bf16.msra.mxu0 %v247_v0  ;;  %v255_v4 = vld [vmem:[%s338_s0] sm:$0xff]  }
   0x4   :  { %226 = vmatprep.subr.bf16.mxu0 %v248_v1  ;;  %240 = vmatprep.mubr.bf16.mxu0 %v255_v4 }
   0x7   :  { %227 = vmatpush3.bf16.msra.mxu0 %v248_v1 }
   0x8   :  { %228 = vmatprep.subr.bf16.mxu0 %v249_v2 }
   0x9   :  { %8 = vsyncpa [#allocation4], 0  ;;  %v251_v5 = vld [vmem:[%s339_s1 + $0x18] sm:$0xff]   ;;  %v252_v6 = vld [vmem:[%s339_s1 + $0x10] sm:$0xff]   ;;  %s279_s7 = smov [#allocation3]  }
   0xa   :  { %v253_v7 = vld [vmem:[%s339_s1 + $0x8] sm:$0xff]   ;;  %v254_v8 = vld [vmem:[%s339_s1] sm:$0xff]   ;;  %s192_s8 = sshll.u32 %s279_s7, 4  ;;  %s193_s8 = int_to_ptr.vmem [resolvable:$true] %s192_s8 }
   0xb   :  { %229 = vmatpush3.bf16.msra.mxu0 %v249_v2  ;;  %v256_v9 = vld [vmem:[%s338_s0 + $0x8] sm:$0xff]   ;;  %v213_v10 = vld [vmem:[%s340_s2] ss:$0 sm:$0xff]  ;;  %s257_s0 = scalar_lea.vmem %s193_s8, 512  ;;  %p262_p1 = scmp.lt.s32.totalorder %s193_s8, %s193_s8 }
   0xc   :  { %230 = vmatprep.subr.bf16.mxu0 %v250_v3  ;;  %p258_p0 = scmp.ne.s32.totalorder %s193_s8, %s257_s0  ;;  %p263_p2 = scmp.lt.s32.totalorder %s257_s0, %s257_s0 }
   0xe   :  { %p264_p3 = por %p263_p2, %p262_p1 }
   0xf   :  { %231 = vmatpush3.bf16.msra.mxu0 %v250_v3 }
  0x10   :  { %232 = vmatprep.subr.bf16.mxu0 %v251_v5  ;;  %p265_p4 = pnand %p264_p3, %p258_p0 }
  0x13   :  { %233 = vmatpush3.bf16.msra.mxu0 %v251_v5 }
  0x14   :  { %234 = vmatprep.subr.bf16.mxu0 %v252_v6 }
  0x17   :  { %235 = vmatpush3.bf16.msra.mxu0 %v252_v6 }
  0x18   :  { %236 = vmatprep.subr.bf16.mxu0 %v253_v7 }
  0x1b   :  { %237 = vmatpush3.bf16.msra.mxu0 %v253_v7 }
  0x1c   :  { %238 = vmatprep.subr.bf16.mxu0 %v254_v8 }
  0x1f   :  { %239 = vmatpush3.bf16.msra.mxu0 %v254_v8 }
  0x22   :  { %241 = vmatmul.mubr.bf16.vlgmr.msra.gmra.mxu0 %v256_v9 }
  0xe2   :  { %v242_v11 = vpop.f32.mrf.mxu0 }
  0xe3   :  { %v181_v12 = vadd.f32 %v242_v11, %v213_v10 }
  0xe4   :  { %v142_v13 = vpop.f32.mrf.mxu0 }
  0xe5   :  { %185 = vst [vmem:[#allocation3 + $0x10] sm:$0xff] %v181_v12  ;;  %v179_v14 = vadd.f32 %v213_v10, %v142_v13 }
  0xe6   :  { %v243_v15 = vpop.f32.mrf.mxu0 }
  0xe7   :  { %183 = vst [vmem:[#allocation3] sm:$0xff] %v179_v14  ;;  %v182_v16 = vadd.f32 %v243_v15, %v213_v10 }
  0xe8   :  { %v145_v17 = vpop.f32.mrf.mxu0 }
  0xe9   :  { %186 = vst [vmem:[#allocation3 + $0x18] sm:$0xff] %v182_v16  ;;  %v180_v18 = vadd.f32 %v213_v10, %v145_v17 }
  0xeb   :  { %184 = vst [vmem:[#allocation3 + $0x8] sm:$0xff] %v180_v18 }
  0xec   :  { %268 = shalt.err (!%p265_p4)
}
  0xed   :  { %s280_s1 = smov 128   ;;  %s281_s2 = smov 8  }
  0xee   :  { %198 = dma.vmem_to_hbm [thread:$0]  %s193_s8, 512, %s341_s3, [#allocation4], %s280_s1, %s280_s1, %s281_s2  }
  0xef   :  { %277 = dma.done.wait [#allocation4], 512  }
  0xf0   :  { %278 = vsyncadd [#allocation4], 4294966784 }
  0xf1   :  { %202 = vsyncpa [#allocation4], 1 }

</bundles_post_ra>
